<compile_context>
chip_gen: v7x
topology: tpu7x:2x2x1
jax: 0.10.0
libtpu: 0.0.40
codegen_flags: <defaults>
</compile_context>

<pallas_src>
import functools

import jax
import jax.numpy as jnp
from jax.experimental import pallas as pl
from jax.experimental.pallas import tpu as pltpu

# Row tile (batch rows per grid step).  2048 rows -> ~0.5 MiB per input block,
# ~3 MiB total with double-buffering + the (tile, 21) accumulator: fits the
# default scoped-VMEM budget on v5e (16 MiB), v6e (32 MiB) and v7x (32 MiB).
_MAX_ROW_TILE = 2048


def _hand_loss_kernel(p_ref, t_ref, g_ref, o_ref, acc_ref, *, inv_count):
    # p_ref, t_ref: (tile, 63) blocks in the callers' native layout/dtype.
    # g_ref:        (63, 21) constant 0/1 grouping matrix (f32).
    # o_ref:        (1, 1) f32 scalar output in SMEM (whole-grid resident).
    # acc_ref:      (tile, 21) f32 VMEM accumulator scratch.
    pid = pl.program_id(0)

    @pl.when(pid == 0)
    def _():
        acc_ref[...] = jnp.zeros_like(acc_ref)

    # Upcast after load so bf16 inputs only pay bf16 DMA bytes.
    p = p_ref[...].astype(jnp.float32)
    t = t_ref[...].astype(jnp.float32)
    diff = p - t                                    # (tile, 63)  VPU
    sq = diff * diff                                # (tile, 63)  VPU
    # Group-of-3 reduce on the idle MXU: (tile, 63) @ (63, 21) -> (tile, 21).
    d2 = jnp.dot(
        sq,
        g_ref[...],
        preferred_element_type=jnp.float32,
        precision=jax.lax.Precision.HIGHEST,
    )
    # Pure-VPU loop-carried accumulation; padded rows contribute sqrt(0) = 0.
    acc_ref[...] += jnp.sqrt(d2)                    # EUP + VPU

    @pl.when(pid == pl.num_programs(0) - 1)
    def _():
        # Single cross-lane reduce for the whole kernel, then scale by the
        # true 1/(B*21) so padding never affects the mean.
        o_ref[0, 0] = jnp.sum(acc_ref[...]) * jnp.float32(inv_count)


def hand_loss(pred, target, *, max_row_tile=_MAX_ROW_TILE):
    """pred, target: (B, 63) -> scalar f32 mean per-joint Euclidean distance."""
    B, C = pred.shape
    assert C == 63 and target.shape == pred.shape
    n_joints = B * 21

    # Row tile: multiple of 8 sublanes, capped; pad B up to a tile multiple.
    b8 = ((B + 7) // 8) * 8
    tile = min(b8, max_row_tile)
    b_pad = ((b8 + tile - 1) // tile) * tile
    p, t = pred, target
    if b_pad != B:  # cheap row-only pad; skipped when B is already aligned
        p = jnp.pad(p, ((0, b_pad - B), (0, 0)))
        t = jnp.pad(t, ((0, b_pad - B), (0, 0)))

    # Constant grouping matrix: G[k, j] = 1 if k // 3 == j else 0.
    g = (
        jnp.arange(63, dtype=jnp.int32)[:, None] // 3
        == jnp.arange(21, dtype=jnp.int32)[None, :]
    ).astype(jnp.float32)

    grid = (b_pad // tile,)
    kernel = functools.partial(_hand_loss_kernel, inv_count=1.0 / float(n_joints))

    itemsize = jnp.dtype(pred.dtype).itemsize
    cost = pl.CostEstimate(
        flops=int(B * (2 * 63 + 2 * 63 * 21 + 2 * 21)),
        transcendentals=int(B * 21),
        bytes_accessed=int(2 * B * 63 * itemsize + 63 * 21 * 4 + 4),
    )

    out = pl.pallas_call(
        kernel,
        out_shape=jax.ShapeDtypeStruct((1, 1), jnp.float32),
        grid=grid,
        in_specs=[
            pl.BlockSpec((tile, 63), lambda i: (i, 0)),   # pred rows
            pl.BlockSpec((tile, 63), lambda i: (i, 0)),   # target rows
            pl.BlockSpec((63, 21), lambda i: (0, 0)),     # constant G
        ],
        # Scalar result in SMEM: avoids a lane-sparse masked vst into an
        # (8,128)-padded VMEM tile + its writeback DMA for a single float.
        out_specs=pl.BlockSpec(memory_space=pltpu.MemorySpace.SMEM),
        scratch_shapes=[pltpu.VMEM((tile, 21), jnp.float32)],
        compiler_params=pltpu.CompilerParams(
            dimension_semantics=("arbitrary",),   # reduction axis (accumulator)
        ),
        cost_estimate=cost,
    )(p, t, g)
    return out[0, 0]


def _reference_loss(pred, target):
    p = pred.astype(jnp.float32).reshape(-1, 21, 3)
    t = target.astype(jnp.float32).reshape(-1, 21, 3)
    d = jnp.sqrt(jnp.sum((p - t) ** 2, axis=-1))    # (B, 21)
    # mean over joints then batch == global mean (every sample has 21 joints)
    return jnp.mean(d)


if __name__ == "__main__":
    key = jax.random.PRNGKey(0)
    k1, k2, k3, k4, k5, k6 = jax.random.split(key, 6)

    # 1) small batch, f32: single-block path (grid=(1,), pad 4 -> 8 rows)
    B = 4
    pred = jax.random.normal(k1, (B, 63), dtype=jnp.float32)
    target = jax.random.normal(k2, (B, 63), dtype=jnp.float32)
    loss = jax.block_until_ready(hand_loss(pred, target))
    ref = _reference_loss(pred, target)
    assert jnp.allclose(loss, ref, rtol=1e-3, atol=1e-4), (loss, ref)

    # 2) multi-step accumulator + row padding path with a tiny row tile
    B2 = 37                                   # pad 37 -> 40 -> 48, grid=(3,)
    pred2 = jax.random.normal(k3, (B2, 63), dtype=jnp.float32)
    target2 = jax.random.normal(k4, (B2, 63), dtype=jnp.float32)
    loss2 = jax.block_until_ready(hand_loss(pred2, target2, max_row_tile=16))
    ref2 = _reference_loss(pred2, target2)
    assert jnp.allclose(loss2, ref2, rtol=1e-3, atol=1e-4), (loss2, ref2)

    # 3) bf16 inputs stay bf16 through the DMA, upcast in-kernel
    B3 = 12
    pred3 = jax.random.normal(k5, (B3, 63), dtype=jnp.bfloat16)
    target3 = jax.random.normal(k6, (B3, 63), dtype=jnp.bfloat16)
    loss3 = jax.block_until_ready(hand_loss(pred3, target3))
    ref3 = _reference_loss(pred3, target3)
    assert jnp.allclose(loss3, ref3, rtol=2e-3, atol=1e-3), (loss3, ref3)

    print("KERNEL_OK")
</pallas_src>

<mosaic_0001>
module attributes {stable_mosaic.version = 11 : i64} {
  func.func @_hand_loss_kernel(%arg0: i32, %arg1: memref<8x63xf32, #tpu.memory_space<vmem>>, %arg2: memref<8x63xf32, #tpu.memory_space<vmem>>, %arg3: memref<63x21xf32, #tpu.memory_space<vmem>>, %arg4: memref<1x1xf32, #tpu.memory_space<smem>>, %arg5: memref<8x21xf32, #tpu.memory_space<vmem>>) attributes {dimension_semantics = [#tpu.dimension_semantics<arbitrary>], iteration_bounds = array<i64: 1>, scalar_prefetch = 0 : i64, scratch_operands = 1 : i64, tpu.core_type = #tpu.core_type<tc>, window_params = [{transform_indices = @transform_0, window_bounds = array<i64: 8, 63>}, {transform_indices = @transform_1, window_bounds = array<i64: 8, 63>}, {pipeline_mode = #tpu.pipeline_mode<synchronous>, transform_indices = @transform_2, window_bounds = array<i64: 63, 21>}, {transform_indices = @transform_3, window_bounds = array<i64: 1, 1>}]} {
    %c0_i32 = arith.constant 0 : i32
    %0 = arith.cmpi eq, %arg0, %c0_i32 : i32
    %1 = arith.extui %0 : i1 to i32
    %c0_i32_0 = arith.constant 0 : i32
    %2 = arith.cmpi ne, %1, %c0_i32_0 : i32
    scf.if %2 {
      %cst_12 = arith.constant 0.000000e+00 : f32
      %16 = vector.broadcast %cst_12 : f32 to vector<8x21xf32>
      %c0_13 = arith.constant 0 : index
      %c0_14 = arith.constant 0 : index
      %17 = vector.load %arg5[%c0_13, %c0_14] : memref<8x21xf32, #tpu.memory_space<vmem>>, vector<8x21xf32>
      tpu.vector_store %arg5[%c0_13, %c0_14], %16 {strides = array<i32>} : memref<8x21xf32, #tpu.memory_space<vmem>>, vector<8x21xf32>,
    } else {
    }
    %c0 = arith.constant 0 : index
    %c0_1 = arith.constant 0 : index
    %3 = vector.load %arg1[%c0, %c0_1] : memref<8x63xf32, #tpu.memory_space<vmem>>, vector<8x63xf32>
    %c0_2 = arith.constant 0 : index
    %c0_3 = arith.constant 0 : index
    %4 = vector.load %arg2[%c0_2, %c0_3] : memref<8x63xf32, #tpu.memory_space<vmem>>, vector<8x63xf32>
    %5 = arith.subf %3, %4 : vector<8x63xf32>
    %6 = arith.mulf %5, %5 : vector<8x63xf32>
    %c0_4 = arith.constant 0 : index
    %c0_5 = arith.constant 0 : index
    %7 = vector.load %arg3[%c0_4, %c0_5] : memref<63x21xf32, #tpu.memory_space<vmem>>, vector<63x21xf32>
    %cst = arith.constant dense<0.000000e+00> : vector<8x21xf32>
    %8 = tpu.matmul %6, %7, %cst {dimension_numbers = #tpu.dot_dimension_numbers<[1], [0], [0], [1], [0, 0, 1, 1], [], []>, precision = #tpu.contract_precision<fp32>} : vector<8x63xf32>, vector<63x21xf32>, vector<8x21xf32> -> vector<8x21xf32>
    %c0_6 = arith.constant 0 : index
    %c0_7 = arith.constant 0 : index
    %9 = vector.load %arg5[%c0_6, %c0_7] : memref<8x21xf32, #tpu.memory_space<vmem>>, vector<8x21xf32>
    %10 = math.sqrt %8 : vector<8x21xf32>
    %11 = arith.addf %9, %10 : vector<8x21xf32>
    %c0_8 = arith.constant 0 : index
    %c0_9 = arith.constant 0 : index
    %12 = vector.load %arg5[%c0_8, %c0_9] : memref<8x21xf32, #tpu.memory_space<vmem>>, vector<8x21xf32>
    tpu.vector_store %arg5[%c0_8, %c0_9], %11 {strides = array<i32>} : memref<8x21xf32, #tpu.memory_space<vmem>>, vector<8x21xf32>,
    %c0_i32_10 = arith.constant 0 : i32
    %13 = arith.cmpi eq, %arg0, %c0_i32_10 : i32
    %14 = arith.extui %13 : i1 to i32
    %c0_i32_11 = arith.constant 0 : i32
    %15 = arith.cmpi ne, %14, %c0_i32_11 : i32
    scf.if %15 {
      %c0_12 = arith.constant 0 : index
      %c0_13 = arith.constant 0 : index
      %16 = vector.load %arg5[%c0_12, %c0_13] : memref<8x21xf32, #tpu.memory_space<vmem>>, vector<8x21xf32>
      %17 = vector.shape_cast %16 : vector<8x21xf32> to vector<1x8x21xf32>
      %cst_14 = arith.constant dense<0.000000e+00> : vector<1xf32>
      %18 = vector.multi_reduction <add>, %17, %cst_14 [1, 2] : vector<1x8x21xf32> to vector<1xf32>
      %19 = vector.shape_cast %18 : vector<1xf32> to vector<1x1x1xf32>
      %20 = vector.extract %19[0, 0, 0] : f32 from vector<1x1x1xf32>
      %cst_15 = arith.constant 0.0119047621 : f32
      %21 = arith.mulf %20, %cst_15 : f32
      %c0_16 = arith.constant 0 : index
      %c0_17 = arith.constant 0 : index
      %22 = memref.load %arg4[%c0_16, %c0_17] : memref<1x1xf32, #tpu.memory_space<smem>>
      memref.store %21, %arg4[%c0_16, %c0_17] : memref<1x1xf32, #tpu.memory_space<smem>>
    } else {
    }
    return
  }
  func.func @transform_0(%arg0: i32) -> (i32, i32) {
    %c0_i32 = arith.constant 0 : i32
    %c0_i32_0 = arith.constant 0 : i32
    return %arg0, %c0_i32 : i32, i32
  }
  func.func @transform_1(%arg0: i32) -> (i32, i32) {
    %c0_i32 = arith.constant 0 : i32
    %c0_i32_0 = arith.constant 0 : i32
    return %arg0, %c0_i32 : i32, i32
  }
  func.func @transform_2(%arg0: i32) -> (i32, i32) {
    %c0_i32 = arith.constant 0 : i32
    %c0_i32_0 = arith.constant 0 : i32
    %c0_i32_1 = arith.constant 0 : i32
    return %c0_i32, %c0_i32_0 : i32, i32
  }
  func.func @transform_3(%arg0: i32) -> (i32, i32) {
    %c0_i32 = arith.constant 0 : i32
    %c0_i32_0 = arith.constant 0 : i32
    %c0_i32_1 = arith.constant 0 : i32
    return %c0_i32, %c0_i32_0 : i32, i32
  }
}

</mosaic_0001>

<bundles_post_ra>
// kernel: tpu_custom_call.1
= control target key start
LH: loop header
LB: loop body
LE: loop exit
PB: predicated region body
PF: predicated region fallthrough
CT: control target
= control target key end

     0   :  { %v888_v3 = vmov 0.0|0.0   ;;  %vm37_vm0 = vcmask 1046528   ;;  %s1065_s0 = inlined_call_operand.vmem [shape: f32[8,63], index: 0, kind: input, shape index: {}]   ;;  %s1066_s1 = inlined_call_operand.vmem [shape: f32[8,63], index: 1, kind: input, shape index: {}]   ;;  %s1067_s2 = inlined_call_operand.vmem [shape: f32[63,21], index: 2, kind: input, shape index: {}]   ;;  %s1068_s3 = inlined_call_operand.hbm [shape: f32[1,1], index: 3, kind: output, shape index: {}]  }
   0x1   :  { %v25_v0 = vld [vmem:[%s1067_s2] sm:$0xff]  ;;  %v26_v1 = vld [vmem:[%s1067_s2 + $0x8] sm:$0xff]  ;;  %v27_v2 = vld [vmem:[%s1067_s2 + $0x10] sm:$0xff]  ;;  %787 = vmatprep.subr.bf16.mxu1 %v888_v3  ;;  %823 = vmatprep.subr.bf16.mxu0 %v888_v3 }
   0x2   :  { %v42_v4 = vand.u32 4294901760, %v25_v0  ;;  %v45_v5 = vand.u32 4294901760, %v26_v1  ;;  %v28_v6 = vld [vmem:[%s1067_s2 + $0x18] sm:$0xff]  ;;  %v48_v7 = vand.u32 4294901760, %v27_v2  ;;  %v29_v8 = vld [vmem:[%s1067_s2 + $0x20] sm:$0xff]  ;;  %v30_v9 = vld [vmem:[%s1067_s2 + $0x28] sm:$0xff] }
   0x3   :  { %v51_v10 = vand.u32 4294901760, %v28_v6  ;;  %v32_v11 = vld [vmem:[%s1067_s2 + $0x38] sm:$0x7f]  ;;  %v21_v15 = vld [vmem:[%s1065_s0] sm:$0xff] }
   0x4   :  { %v935_v12 = vpack.c.bf16 %v45_v5, %v42_v4  ;;  %v937_v13 = vsub.f32 %v25_v0, %v42_v4  ;;  %v939_v14 = vsub.f32 %v26_v1, %v45_v5  ;;  %v22_v16 = vld [vmem:[%s1066_s1] sm:$0xff] }
   0x5   :  { %8 = vsyncpa [#allocation4], 0  ;;  %v947_v17 = vsub.f32 %v27_v2, %v48_v7  ;;  %v54_v18 = vand.u32 4294901760, %v29_v8  ;;  %v57_v19 = vand.u32 4294901760, %v30_v9  ;;  %v951_v20 = vpack.c.bf16 %v51_v10, %v48_v7  ;;  %v31_v22 = vld [vmem:[%s1067_s2 + $0x30] sm:$0xff]  ;;  %s876_s6 = scalar_lea.hbm %s1068_s3, 16 }
   0x6   :  { %789 = vmatpush3.bf16.msra.mxu1 %v935_v12  ;;  %825 = vmatpush3.bf16.msra.mxu0 %v935_v12  ;;  %v953_v21 = vsub.f32 %v28_v6, %v51_v10  ;;  %v39_v23 = vsel %vm37_vm0, %v32_v11, 0  ;;  %v23_v24 = vsub.f32 %v21_v15, %v22_v16  ;;  %v127_v25 = vand.u32 4294901760, %v937_v13  ;;  %p877_p0 = scmp.ne.s32.totalorder %s1068_s3, %s876_s6  ;;  %p880_p1 = scmp.lt.u32.totalorder %s876_s6, %s1068_s3 }
   0x7   :  { %790 = vmatprep.subr.bf16.mxu1 %v888_v3  ;;  %826 = vmatprep.subr.bf16.mxu0 %v888_v3  ;;  %vm889_vm1 = vmmov 0   ;;  %v890_v26 = vmov 0.0   ;;  %vm33_vm2 = vcmask 515072   ;;  %v134_v27 = vand.u32 4294901760, %v939_v14 }
   0x8   :  { %689 = vmatprep.mubr.msk.f32.mxu1 %vm889_vm1, %v890_v26  ;;  %746 = vmatprep.mubr.msk.f32.mxu0 %vm889_vm1, %v890_v26  ;;  %v60_v28 = vand.u32 4294901760, %v31_v22  ;;  %v63_v29 = vand.u32 4294901760, %v39_v23  ;;  %v24_v30 = vmul.f32 %v23_v24, %v23_v24  ;;  %v968_v31 = vpack.c.bf16 %v57_v19, %v54_v18  ;;  %p882_p2 = pnand %p880_p1, %p877_p0 }
   0x9   :  { %v970_v32 = vsub.f32 %v29_v8, %v54_v18  ;;  %v141_v33 = vand.u32 4294901760, %v947_v17  ;;  %v148_v34 = vand.u32 4294901760, %v953_v21  ;;  %v976_v35 = vsub.f32 %v30_v9, %v57_v19 }
   0xa   :  { %792 = vmatpush3.bf16.msra.mxu1 %v951_v20  ;;  %828 = vmatpush3.bf16.msra.mxu0 %v951_v20  ;;  %v35_v36 = vsel %vm33_vm2, %v24_v30, 0  ;;  %v128_v37 = vsub.f32 %v937_v13, %v127_v25  ;;  %v135_v38 = vsub.f32 %v939_v14, %v134_v27  ;;  %v982_v40 = vpack.c.bf16 %v63_v29, %v60_v28 }
   0xb   :  { %793 = vmatprep.subr.bf16.mxu1 %v888_v3  ;;  %829 = vmatprep.subr.bf16.mxu0 %v888_v3  ;;  %v980_v39 = vand.u32 4294901760, %v35_v36  ;;  %v984_v41 = vsub.f32 %v31_v22, %v60_v28  ;;  %v142_v43 = vsub.f32 %v947_v17, %v141_v33  ;;  %v149_v44 = vsub.f32 %v953_v21, %v148_v34 }
   0xc   :  { %v155_v45 = vand.u32 4294901760, %v970_v32  ;;  %v996_v46 = vsub.f32 %v39_v23, %v63_v29  ;;  %v129_v47 = vand.u32 4294901760, %v128_v37  ;;  %v136_v48 = vand.u32 4294901760, %v135_v38 }
   0xd   :  { %v989_v42 = vsub.f32 %v35_v36, %v980_v39  ;;  %v162_v49 = vand.u32 4294901760, %v976_v35  ;;  %v836_v51 = vpack.c.bf16 %v134_v27, %v127_v25  ;;  %v143_v53 = vand.u32 4294901760, %v142_v43 }
   0xe   :  { %795 = vmatpush3.bf16.msra.mxu1 %v968_v31  ;;  %831 = vmatpush3.bf16.msra.mxu0 %v968_v31  ;;  %v150_v54 = vand.u32 4294901760, %v149_v44  ;;  %v156_v55 = vsub.f32 %v970_v32, %v155_v45  ;;  %v800_v56 = vpack.c.bf16 %v136_v48, %v129_v47  ;;  %v169_v58 = vand.u32 4294901760, %v984_v41 }
   0xf   :  { %796 = vmatprep.subr.bf16.mxu1 %v888_v3  ;;  %832 = vmatprep.subr.bf16.mxu0 %v888_v3  ;;  %v116_v50 = vand.u32 4294901760, %v989_v42  ;;  %v163_v57 = vsub.f32 %v976_v35, %v162_v49  ;;  %v176_v59 = vand.u32 4294901760, %v996_v46  ;;  %v839_v61 = vpack.c.bf16 %v148_v34, %v141_v33 }
  0x10   :  { %v157_v62 = vand.u32 4294901760, %v156_v55  ;;  %v803_v63 = vpack.c.bf16 %v150_v54, %v143_v53  ;;  %v170_v1 = vsub.f32 %v984_v41, %v169_v58  ;;  %v842_v4 = vpack.c.bf16 %v162_v49, %v155_v45 }
  0x11   :  { %v117_v52 = vsub.f32 %v989_v42, %v116_v50  ;;  %v164_v0 = vand.u32 4294901760, %v163_v57  ;;  %v177_v2 = vsub.f32 %v996_v46, %v176_v59  ;;  %v845_v8 = vpack.c.bf16 %v176_v59, %v169_v58 }
  0x12   :  { %798 = vmatpush3.bf16.msra.mxu1 %v982_v40  ;;  %834 = vmatpush3.bf16.msra.mxu0 %v982_v40  ;;  %v171_v6 = vand.u32 4294901760, %v170_v1  ;;  %v812_v10 = vpack.c.bf16 %v939_v14, %v937_v13  ;;  %v815_v11 = vpack.c.bf16 %v953_v21, %v947_v17  ;;  %v821_v13 = vpack.c.bf16 %v996_v46, %v984_v41 }
  0x13   :  { %799 = vmatprep.subr.bf16.mxu1 %v888_v3  ;;  %835 = vmatprep.subr.bf16.mxu0 %v888_v3  ;;  %v118_v60 = vand.u32 4294901760, %v117_v52  ;;  %v806_v5 = vpack.c.bf16 %v164_v0, %v157_v62  ;;  %v178_v7 = vand.u32 4294901760, %v177_v2  ;;  %vm19_vm3 = vcmask 171008  }
  0x14   :  { %20 = vst.msk [vmem:[#allocation2] sm:$0xff] %vm19_vm3, %v890_v26 }
  0x15   :  { %747 = vmatmul.mubr.f32.vlgmr.msra.gmra.mrb[0].mxu0 %v116_v50  ;;  %690 = vmatmul.mubr.f32.vlgmr.msra.gmra.mrb[0].mxu1 %v118_v60  ;;  %v809_v9 = vpack.c.bf16 %v178_v7, %v171_v6 }
  0x16   :  { %837 = vmatpush3.bf16.msra.mxu0 %v836_v51  ;;  %801 = vmatpush3.bf16.msra.mxu1 %v800_v56 }
  0x17   :  { %838 = vmatprep.subr.bf16.mxu0 %v888_v3  ;;  %802 = vmatprep.subr.bf16.mxu1 %v888_v3 }
  0x18   :  { %708 = vmatprep.mubr.msk.f32.mxu1 %vm889_vm1, %v890_v26  ;;  %765 = vmatprep.mubr.msk.f32.mxu0 %vm889_vm1, %v890_v26 }
  0x1a   :  { %840 = vmatpush3.bf16.msra.mxu0 %v839_v61  ;;  %804 = vmatpush3.bf16.msra.mxu1 %v803_v63 }
  0x1b   :  { %841 = vmatprep.subr.bf16.mxu0 %v888_v3  ;;  %805 = vmatprep.subr.bf16.mxu1 %v888_v3 }
  0x1e   :  { %843 = vmatpush3.bf16.msra.mxu0 %v842_v4  ;;  %807 = vmatpush3.bf16.msra.mxu1 %v806_v5 }
  0x1f   :  { %844 = vmatprep.subr.bf16.mxu0 %v888_v3  ;;  %808 = vmatprep.subr.bf16.mxu1 %v888_v3 }
  0x22   :  { %846 = vmatpush3.bf16.msra.mxu0 %v845_v8  ;;  %810 = vmatpush3.bf16.msra.mxu1 %v809_v9 }
  0x23   :  { %847 = vmatprep.subr.bf16.mxu0 %v888_v3  ;;  %811 = vmatprep.subr.bf16.mxu1 %v888_v3 }
  0x25   :  { %766 = vmatmul.mubr.f32.vlgmr.msra.gmra.mrb[0].mxu0 %v980_v39  ;;  %709 = vmatmul.mubr.f32.vlgmr.msra.gmra.mrb[0].mxu1 %v980_v39 }
  0x26   :  { %849 = vmatpush3.bf16.msra.mxu0 %v935_v12  ;;  %813 = vmatpush3.bf16.msra.mxu1 %v812_v10  ;;  %v818_v12 = vpack.c.bf16 %v976_v35, %v970_v32 }
  0x27   :  { %850 = vmatprep.subr.bf16.mxu0 %v888_v3  ;;  %814 = vmatprep.subr.bf16.mxu1 %v888_v3 }
  0x28   :  { %727 = vmatprep.mubr.msk.f32.mxu1 %vm889_vm1, %v890_v26  ;;  %784 = vmatprep.mubr.msk.f32.mxu0 %vm889_vm1, %v890_v26 }
  0x2a   :  { %852 = vmatpush3.bf16.msra.mxu0 %v951_v20  ;;  %816 = vmatpush3.bf16.msra.mxu1 %v815_v11 }
  0x2b   :  { %853 = vmatprep.subr.bf16.mxu0 %v888_v3  ;;  %817 = vmatprep.subr.bf16.mxu1 %v888_v3 }
  0x2e   :  { %855 = vmatpush3.bf16.msra.mxu0 %v968_v31  ;;  %819 = vmatpush3.bf16.msra.mxu1 %v818_v12 }
  0x2f   :  { %856 = vmatprep.subr.bf16.mxu0 %v888_v3  ;;  %820 = vmatprep.subr.bf16.mxu1 %v888_v3  ;;  %v578_v3 = vld [vmem:[#allocation2] sm:$0xff] }
  0x32   :  { %858 = vmatpush3.bf16.msra.mxu0 %v982_v40  ;;  %822 = vmatpush3.bf16.msra.mxu1 %v821_v13 }
  0x35   :  { %785 = vmatmul.mubr.f32.vlgmr.msra.gmra.mrb[0].mxu0 %v980_v39  ;;  %728 = vmatmul.mubr.f32.vlgmr.msra.gmra.mrb[0].mxu1 %v989_v42 }
 0x108   :  { %v574_v14 = vpop.f32.mrb[0].mxu0  ;;  %v319_v15 = vpop.f32.mrb[0].mxu1 }
 0x109   :  { %v786_v16 = vpop.f32.mrb[1].mxu0  ;;  %v859_v17 = vadd.f32 %v574_v14, %v319_v15  ;;  %v729_v18 = vpop.f32.mrb[1].mxu1 }
 0x10b   :  { %874 = vrsqrt.f32 %v859_v17  ;;  %vm581_vm4 = vcmp.eq.f32.partialorder %v859_v17, inf  ;;  %v584_v21 = vand.u32 2147483648, %v859_v17  ;;  %vm583_vm5 = vcmp.eq.f32.partialorder %v859_v17, 0.0 }
 0x115   :  { %v875_v19 = vpop.eup %874 }
 0x116   :  { %v580_v20 = vmul.f32 %v875_v19, %v859_v17 }
 0x118   :  { %v582_v22 = vsel %vm581_vm4, %v859_v17, %v580_v20 }
 0x119   :  { %v585_v23 = vsel %vm583_vm5, %v584_v21, %v582_v22 }
 0x11a   :  { %v586_v24 = vadd.f32 %v585_v23, %v578_v3 }
 0x11c   :  { %588 = vst.msk [vmem:[#allocation2] sm:$0xff] %vm19_vm3, %v586_v24 }
 0x123   :  { %v592_v25 = vld [vmem:[#allocation2] sm:$0xff] }
 0x124   :  { %v593_v26 = vsel %vm19_vm3, %v592_v25, 0.0 }
 0x125   :  { %594 = vadd.xlane.f32.xlu0 %v593_v26 }
 0x1b2   :  { %v595_v27 = vpop.xlane.xlu0 %594 }
 0x1b3   :  { %v596_v28 = vrot.slane %v595_v27, 4 }
 0x1b5   :  { %v597_v29 = vadd.f32 %v596_v28, %v595_v27 }
 0x1b7   :  { %v598_v30 = vrot.slane %v597_v29, 2 }
 0x1b9   :  { %v599_v31 = vadd.f32 %v598_v30, %v597_v29 }
 0x1bb   :  { %v600_v32 = vrot.slane %v599_v31, 1 }
 0x1bd   :  { %v601_v33 = vadd.f32 %v600_v32, %v599_v31 }
 0x1bf   :  { %868 = vpush %v601_v33 }
 0x1f0   :  { %s869_s0 = spop %868 }
 0x1f1   :  { %s603_s1 = smul.f32 0.011904762, %s869_s0 }
 0x1f3   :  { %605 = sst [smem:[#allocation3]] %s603_s1 }
 0x1f4   :  { %885 = shalt.err (!%p882_p2)
}
 0x1f5   :  { %s891_s11 = smov [#allocation3]  }
 0x1f6   :  { %613 = dma.smem_to_hbm %s891_s11, 16, %s1068_s3, [#allocation4]  }
 0x1f7   :  { %886 = dma.done.wait [#allocation4], 16  }
 0x1f8   :  { %887 = vsyncadd [#allocation4], 4294967280 }
 0x1f9   :  { %617 = sfence }
 0x1fa   :  { %618 = vsyncpa [#allocation4], 1 }

</bundles_post_ra>
